<compile_context>
chip_gen: v5e
topology: v5e:2x2
jax: 0.10.0
libtpu: 0.0.40
codegen_flags: <defaults>
</compile_context>

<pallas_src>
import jax
import jax.numpy as jnp
from jax.experimental import pallas as pl
from jax.experimental.pallas import tpu as pltpu


def _residual_conv1x1_kernel(x_ref, w_ref, b_ref, o_ref):
    """Fused 1x1-conv + residual on one [C, S, 128] tile.

    x_ref, o_ref : (C, S, 128) VMEM -- each channel is a dense sublane/lane slab.
    w_ref        : (C, C) SMEM      -- conv weight, read as scalars.
    b_ref        : (C,)   SMEM      -- conv bias, read as scalars.
    """
    C = x_ref.shape[0]

    # Load each input channel once (ref-indexed dense slab); it feeds all C
    # output accumulators.  Unrolled VPU contraction, no MXU for tiny C.
    xs = [x_ref[c].astype(jnp.float32) for c in range(C)]

    for o in range(C):
        acc = xs[o] + b_ref[o]                      # residual + bias
        for c in range(C):
            acc = acc + w_ref[o, c] * xs[c]         # scalar-broadcast FMA
        o_ref[o] = acc.astype(o_ref.dtype)          # dense full-slab store


def residual_pointwise_conv(x_nchw, weight, bias, *, target_block_bytes=2 << 20):
    """fn(x) + x  where fn = Conv2d(C, C, kernel_size=1), NCHW in / NCHW out.

    x_nchw : [B, C, H, W]
    weight : [C_out, C_in]   (1x1 conv kernel, squeezed)
    bias   : [C_out]
    """
    B, C, H, W = x_nchw.shape
    # TODO(synk): for large, 128/256-aligned C switch to an MXU-tiled variant;
    # this VPU-unrolled path targets the small-C case of this module.
    assert C <= 32, "VPU-unrolled path is intended for small channel counts"

    HW = H * W
    itemsize = jnp.dtype(x_nchw.dtype).itemsize
    LANES = 128

    # Fold the spatial axis into (sublane, lane) = (S, 128) dense slabs.
    HW_pad = -(-HW // LANES) * LANES
    if HW_pad != HW:
        # TODO(synk): avoid this pad copy (e.g. BoundedSlice over a flat HW axis)
        x_flat = jnp.pad(x_nchw.reshape(B, C, HW),
                         ((0, 0), (0, 0), (0, HW_pad - HW)))
    else:
        x_flat = x_nchw.reshape(B, C, HW)          # free reshape
    S_total = HW_pad // LANES
    x4 = x_flat.reshape(B, C, S_total, LANES)      # free reshape

    # Sublane-pad granularity for this dtype (f32: 8, bf16: 16, int8: 32).
    sub = max(8, 8 * (4 // itemsize))

    # S tile from a ~target_block_bytes budget, multiple of `sub`.
    s_target = max(sub, (target_block_bytes // (C * LANES * itemsize) // sub) * sub)
    s_tile = S_total if S_total <= s_target else s_target
    n_s = -(-S_total // s_tile)

    # v7x: make sure both TensorCores get at least one block.
    if B * n_s < 2 and S_total >= 2 * sub:
        s_tile = -(-((S_total + 1) // 2) // sub) * sub
        n_s = -(-S_total // s_tile)

    # VMEM budget from the *padded* block: 2x double-buffered in + 2x out
    # + headroom, clamped to stay v7x-safe (64 MiB VMEM / TC, 32 MiB scoped).
    s_pad = -(-s_tile // sub) * sub
    block_bytes = C * s_pad * LANES * itemsize
    vmem_limit = int(min(max(4 * block_bytes + (2 << 20), 4 << 20), 24 << 20))

    cost = pl.CostEstimate(
        flops=2 * B * HW_pad * C * C,
        transcendentals=0,
        bytes_accessed=2 * B * C * HW_pad * itemsize + C * C * 4 + C * 4,
    )

    data_spec = pl.BlockSpec((None, C, s_tile, LANES), lambda b, t: (b, 0, t, 0))

    out4 = pl.pallas_call(
        _residual_conv1x1_kernel,
        out_shape=jax.ShapeDtypeStruct((B, C, S_total, LANES), x_nchw.dtype),
        grid=(B, n_s),
        in_specs=[
            data_spec,                                             # x tile
            pl.BlockSpec(memory_space=pltpu.MemorySpace.SMEM),     # weight
            pl.BlockSpec(memory_space=pltpu.MemorySpace.SMEM),     # bias
        ],
        out_specs=pl.BlockSpec((None, C, s_tile, LANES), lambda b, t: (b, 0, t, 0)),
        compiler_params=pltpu.CompilerParams(
            dimension_semantics=("parallel", "parallel"),
            vmem_limit_bytes=vmem_limit,
        ),
        cost_estimate=cost,
    )(x4, weight.astype(jnp.float32), bias.astype(jnp.float32))

    out_flat = out4.reshape(B, C, HW_pad)
    if HW_pad != HW:
        out_flat = out_flat[:, :, :HW]
    return out_flat.reshape(B, C, H, W)            # free reshape back to NCHW


if __name__ == "__main__":
    key = jax.random.PRNGKey(0)
    kx, kw, kb = jax.random.split(key, 3)

    B, C, H, W = 2, 4, 16, 16
    x = jax.random.normal(kx, (B, C, H, W), dtype=jnp.float32)

    # Deterministic "fn" parameters (1x1 conv == channel-mixing matmul).
    weight = jax.random.normal(kw, (C, C), dtype=jnp.float32) * 0.1
    bias = jax.random.normal(kb, (C,), dtype=jnp.float32) * 0.1

    out = residual_pointwise_conv(x, weight, bias)
    out = jax.block_until_ready(out)

    # Pure-JAX reference: fn(x) + x with fn = 1x1 conv in NCHW.
    ref = jnp.einsum("oc,bchw->bohw", weight, x) + bias[None, :, None, None] + x
    assert out.shape == (B, C, H, W)
    assert jnp.allclose(out, ref, atol=1e-5, rtol=1e-5)

    print("KERNEL_OK")
</pallas_src>

<mosaic_0001>
module attributes {stable_mosaic.version = 11 : i64} {
  func.func @_residual_conv1x1_kernel(%arg0: i32, %arg1: i32, %arg2: memref<1x4x2x128xf32, #tpu.memory_space<vmem>>, %arg3: memref<4x4xf32, #tpu.memory_space<smem>>, %arg4: memref<4xf32, #tpu.memory_space<smem>>, %arg5: memref<1x4x2x128xf32, #tpu.memory_space<vmem>>) attributes {dimension_semantics = [#tpu.dimension_semantics<parallel>, #tpu.dimension_semantics<parallel>], iteration_bounds = array<i64: 2, 1>, scalar_prefetch = 0 : i64, scratch_operands = 0 : i64, tpu.core_type = #tpu.core_type<tc>, window_params = [{transform_indices = @transform_0, window_bounds = array<i64: 1, 4, 2, 128>}, {transform_indices = @transform_1, window_bounds = array<i64: 4, 4>}, {transform_indices = @transform_2, window_bounds = array<i64: 4>}, {transform_indices = @transform_3, window_bounds = array<i64: 1, 4, 2, 128>}]} {
    %c0 = arith.constant 0 : index
    %c0_0 = arith.constant 0 : index
    %c0_1 = arith.constant 0 : index
    %c0_2 = arith.constant 0 : index
    %0 = vector.load %arg2[%c0, %c0_0, %c0_1, %c0_2] : memref<1x4x2x128xf32, #tpu.memory_space<vmem>>, vector<1x1x2x128xf32>
    %1 = vector.shape_cast %0 : vector<1x1x2x128xf32> to vector<2x128xf32>
    %c0_3 = arith.constant 0 : index
    %c1 = arith.constant 1 : index
    %c0_4 = arith.constant 0 : index
    %c0_5 = arith.constant 0 : index
    %2 = vector.load %arg2[%c0_3, %c1, %c0_4, %c0_5] : memref<1x4x2x128xf32, #tpu.memory_space<vmem>>, vector<1x1x2x128xf32>
    %3 = vector.shape_cast %2 : vector<1x1x2x128xf32> to vector<2x128xf32>
    %c0_6 = arith.constant 0 : index
    %c2 = arith.constant 2 : index
    %c0_7 = arith.constant 0 : index
    %c0_8 = arith.constant 0 : index
    %4 = vector.load %arg2[%c0_6, %c2, %c0_7, %c0_8] : memref<1x4x2x128xf32, #tpu.memory_space<vmem>>, vector<1x1x2x128xf32>
    %5 = vector.shape_cast %4 : vector<1x1x2x128xf32> to vector<2x128xf32>
    %c0_9 = arith.constant 0 : index
    %c3 = arith.constant 3 : index
    %c0_10 = arith.constant 0 : index
    %c0_11 = arith.constant 0 : index
    %6 = vector.load %arg2[%c0_9, %c3, %c0_10, %c0_11] : memref<1x4x2x128xf32, #tpu.memory_space<vmem>>, vector<1x1x2x128xf32>
    %7 = vector.shape_cast %6 : vector<1x1x2x128xf32> to vector<2x128xf32>
    %c0_12 = arith.constant 0 : index
    %8 = memref.load %arg4[%c0_12] : memref<4xf32, #tpu.memory_space<smem>>
    %9 = vector.broadcast %8 : f32 to vector<2x128xf32>
    %10 = arith.addf %1, %9 : vector<2x128xf32>
    %c0_13 = arith.constant 0 : index
    %c0_14 = arith.constant 0 : index
    %11 = memref.load %arg3[%c0_13, %c0_14] : memref<4x4xf32, #tpu.memory_space<smem>>
    %12 = vector.broadcast %11 : f32 to vector<2x128xf32>
    %13 = arith.mulf %12, %1 : vector<2x128xf32>
    %14 = arith.addf %10, %13 : vector<2x128xf32>
    %c0_15 = arith.constant 0 : index
    %c1_16 = arith.constant 1 : index
    %15 = memref.load %arg3[%c0_15, %c1_16] : memref<4x4xf32, #tpu.memory_space<smem>>
    %16 = vector.broadcast %15 : f32 to vector<2x128xf32>
    %17 = arith.mulf %16, %3 : vector<2x128xf32>
    %18 = arith.addf %14, %17 : vector<2x128xf32>
    %c0_17 = arith.constant 0 : index
    %c2_18 = arith.constant 2 : index
    %19 = memref.load %arg3[%c0_17, %c2_18] : memref<4x4xf32, #tpu.memory_space<smem>>
    %20 = vector.broadcast %19 : f32 to vector<2x128xf32>
    %21 = arith.mulf %20, %5 : vector<2x128xf32>
    %22 = arith.addf %18, %21 : vector<2x128xf32>
    %c0_19 = arith.constant 0 : index
    %c3_20 = arith.constant 3 : index
    %23 = memref.load %arg3[%c0_19, %c3_20] : memref<4x4xf32, #tpu.memory_space<smem>>
    %24 = vector.broadcast %23 : f32 to vector<2x128xf32>
    %25 = arith.mulf %24, %7 : vector<2x128xf32>
    %26 = arith.addf %22, %25 : vector<2x128xf32>
    %c0_21 = arith.constant 0 : index
    %c0_22 = arith.constant 0 : index
    %c0_23 = arith.constant 0 : index
    %c0_24 = arith.constant 0 : index
    %27 = vector.load %arg5[%c0_21, %c0_22, %c0_23, %c0_24] : memref<1x4x2x128xf32, #tpu.memory_space<vmem>>, vector<1x1x2x128xf32>
    %28 = vector.shape_cast %27 : vector<1x1x2x128xf32> to vector<2x128xf32>
    %29 = vector.shape_cast %26 : vector<2x128xf32> to vector<1x1x2x128xf32>
    tpu.vector_store %arg5[%c0_21, %c0_22, %c0_23, %c0_24], %29 {strides = array<i32>} : memref<1x4x2x128xf32, #tpu.memory_space<vmem>>, vector<1x1x2x128xf32>,
    %c1_25 = arith.constant 1 : index
    %30 = memref.load %arg4[%c1_25] : memref<4xf32, #tpu.memory_space<smem>>
    %31 = vector.broadcast %30 : f32 to vector<2x128xf32>
    %32 = arith.addf %3, %31 : vector<2x128xf32>
    %c1_26 = arith.constant 1 : index
    %c0_27 = arith.constant 0 : index
    %33 = memref.load %arg3[%c1_26, %c0_27] : memref<4x4xf32, #tpu.memory_space<smem>>
    %34 = vector.broadcast %33 : f32 to vector<2x128xf32>
    %35 = arith.mulf %34, %1 : vector<2x128xf32>
    %36 = arith.addf %32, %35 : vector<2x128xf32>
    %c1_28 = arith.constant 1 : index
    %c1_29 = arith.constant 1 : index
    %37 = memref.load %arg3[%c1_28, %c1_29] : memref<4x4xf32, #tpu.memory_space<smem>>
    %38 = vector.broadcast %37 : f32 to vector<2x128xf32>
    %39 = arith.mulf %38, %3 : vector<2x128xf32>
    %40 = arith.addf %36, %39 : vector<2x128xf32>
    %c1_30 = arith.constant 1 : index
    %c2_31 = arith.constant 2 : index
    %41 = memref.load %arg3[%c1_30, %c2_31] : memref<4x4xf32, #tpu.memory_space<smem>>
    %42 = vector.broadcast %41 : f32 to vector<2x128xf32>
    %43 = arith.mulf %42, %5 : vector<2x128xf32>
    %44 = arith.addf %40, %43 : vector<2x128xf32>
    %c1_32 = arith.constant 1 : index
    %c3_33 = arith.constant 3 : index
    %45 = memref.load %arg3[%c1_32, %c3_33] : memref<4x4xf32, #tpu.memory_space<smem>>
    %46 = vector.broadcast %45 : f32 to vector<2x128xf32>
    %47 = arith.mulf %46, %7 : vector<2x128xf32>
    %48 = arith.addf %44, %47 : vector<2x128xf32>
    %c0_34 = arith.constant 0 : index
    %c1_35 = arith.constant 1 : index
    %c0_36 = arith.constant 0 : index
    %c0_37 = arith.constant 0 : index
    %49 = vector.load %arg5[%c0_34, %c1_35, %c0_36, %c0_37] : memref<1x4x2x128xf32, #tpu.memory_space<vmem>>, vector<1x1x2x128xf32>
    %50 = vector.shape_cast %49 : vector<1x1x2x128xf32> to vector<2x128xf32>
    %51 = vector.shape_cast %48 : vector<2x128xf32> to vector<1x1x2x128xf32>
    tpu.vector_store %arg5[%c0_34, %c1_35, %c0_36, %c0_37], %51 {strides = array<i32>} : memref<1x4x2x128xf32, #tpu.memory_space<vmem>>, vector<1x1x2x128xf32>,
    %c2_38 = arith.constant 2 : index
    %52 = memref.load %arg4[%c2_38] : memref<4xf32, #tpu.memory_space<smem>>
    %53 = vector.broadcast %52 : f32 to vector<2x128xf32>
    %54 = arith.addf %5, %53 : vector<2x128xf32>
    %c2_39 = arith.constant 2 : index
    %c0_40 = arith.constant 0 : index
    %55 = memref.load %arg3[%c2_39, %c0_40] : memref<4x4xf32, #tpu.memory_space<smem>>
    %56 = vector.broadcast %55 : f32 to vector<2x128xf32>
    %57 = arith.mulf %56, %1 : vector<2x128xf32>
    %58 = arith.addf %54, %57 : vector<2x128xf32>
    %c2_41 = arith.constant 2 : index
    %c1_42 = arith.constant 1 : index
    %59 = memref.load %arg3[%c2_41, %c1_42] : memref<4x4xf32, #tpu.memory_space<smem>>
    %60 = vector.broadcast %59 : f32 to vector<2x128xf32>
    %61 = arith.mulf %60, %3 : vector<2x128xf32>
    %62 = arith.addf %58, %61 : vector<2x128xf32>
    %c2_43 = arith.constant 2 : index
    %c2_44 = arith.constant 2 : index
    %63 = memref.load %arg3[%c2_43, %c2_44] : memref<4x4xf32, #tpu.memory_space<smem>>
    %64 = vector.broadcast %63 : f32 to vector<2x128xf32>
    %65 = arith.mulf %64, %5 : vector<2x128xf32>
    %66 = arith.addf %62, %65 : vector<2x128xf32>
    %c2_45 = arith.constant 2 : index
    %c3_46 = arith.constant 3 : index
    %67 = memref.load %arg3[%c2_45, %c3_46] : memref<4x4xf32, #tpu.memory_space<smem>>
    %68 = vector.broadcast %67 : f32 to vector<2x128xf32>
    %69 = arith.mulf %68, %7 : vector<2x128xf32>
    %70 = arith.addf %66, %69 : vector<2x128xf32>
    %c0_47 = arith.constant 0 : index
    %c2_48 = arith.constant 2 : index
    %c0_49 = arith.constant 0 : index
    %c0_50 = arith.constant 0 : index
    %71 = vector.load %arg5[%c0_47, %c2_48, %c0_49, %c0_50] : memref<1x4x2x128xf32, #tpu.memory_space<vmem>>, vector<1x1x2x128xf32>
    %72 = vector.shape_cast %71 : vector<1x1x2x128xf32> to vector<2x128xf32>
    %73 = vector.shape_cast %70 : vector<2x128xf32> to vector<1x1x2x128xf32>
    tpu.vector_store %arg5[%c0_47, %c2_48, %c0_49, %c0_50], %73 {strides = array<i32>} : memref<1x4x2x128xf32, #tpu.memory_space<vmem>>, vector<1x1x2x128xf32>,
    %c3_51 = arith.constant 3 : index
    %74 = memref.load %arg4[%c3_51] : memref<4xf32, #tpu.memory_space<smem>>
    %75 = vector.broadcast %74 : f32 to vector<2x128xf32>
    %76 = arith.addf %7, %75 : vector<2x128xf32>
    %c3_52 = arith.constant 3 : index
    %c0_53 = arith.constant 0 : index
    %77 = memref.load %arg3[%c3_52, %c0_53] : memref<4x4xf32, #tpu.memory_space<smem>>
    %78 = vector.broadcast %77 : f32 to vector<2x128xf32>
    %79 = arith.mulf %78, %1 : vector<2x128xf32>
    %80 = arith.addf %76, %79 : vector<2x128xf32>
    %c3_54 = arith.constant 3 : index
    %c1_55 = arith.constant 1 : index
    %81 = memref.load %arg3[%c3_54, %c1_55] : memref<4x4xf32, #tpu.memory_space<smem>>
    %82 = vector.broadcast %81 : f32 to vector<2x128xf32>
    %83 = arith.mulf %82, %3 : vector<2x128xf32>
    %84 = arith.addf %80, %83 : vector<2x128xf32>
    %c3_56 = arith.constant 3 : index
    %c2_57 = arith.constant 2 : index
    %85 = memref.load %arg3[%c3_56, %c2_57] : memref<4x4xf32, #tpu.memory_space<smem>>
    %86 = vector.broadcast %85 : f32 to vector<2x128xf32>
    %87 = arith.mulf %86, %5 : vector<2x128xf32>
    %88 = arith.addf %84, %87 : vector<2x128xf32>
    %c3_58 = arith.constant 3 : index
    %c3_59 = arith.constant 3 : index
    %89 = memref.load %arg3[%c3_58, %c3_59] : memref<4x4xf32, #tpu.memory_space<smem>>
    %90 = vector.broadcast %89 : f32 to vector<2x128xf32>
    %91 = arith.mulf %90, %7 : vector<2x128xf32>
    %92 = arith.addf %88, %91 : vector<2x128xf32>
    %c0_60 = arith.constant 0 : index
    %c3_61 = arith.constant 3 : index
    %c0_62 = arith.constant 0 : index
    %c0_63 = arith.constant 0 : index
    %93 = vector.load %arg5[%c0_60, %c3_61, %c0_62, %c0_63] : memref<1x4x2x128xf32, #tpu.memory_space<vmem>>, vector<1x1x2x128xf32>
    %94 = vector.shape_cast %93 : vector<1x1x2x128xf32> to vector<2x128xf32>
    %95 = vector.shape_cast %92 : vector<2x128xf32> to vector<1x1x2x128xf32>
    tpu.vector_store %arg5[%c0_60, %c3_61, %c0_62, %c0_63], %95 {strides = array<i32>} : memref<1x4x2x128xf32, #tpu.memory_space<vmem>>, vector<1x1x2x128xf32>,
    return
  }
  func.func @transform_0(%arg0: i32, %arg1: i32) -> (i32, i32, i32, i32) {
    %c0_i32 = arith.constant 0 : i32
    %c0_i32_0 = arith.constant 0 : i32
    %c0_i32_1 = arith.constant 0 : i32
    return %arg0, %c0_i32, %arg1, %c0_i32_0 : i32, i32, i32, i32
  }
  func.func @transform_1(%arg0: i32, %arg1: i32) -> (i32, i32) {
    %c0_i32 = arith.constant 0 : i32
    %c0_i32_0 = arith.constant 0 : i32
    %c0_i32_1 = arith.constant 0 : i32
    return %c0_i32, %c0_i32_0 : i32, i32
  }
  func.func @transform_2(%arg0: i32, %arg1: i32) -> i32 {
    %c0_i32 = arith.constant 0 : i32
    %c0_i32_0 = arith.constant 0 : i32
    return %c0_i32 : i32
  }
  func.func @transform_3(%arg0: i32, %arg1: i32) -> (i32, i32, i32, i32) {
    %c0_i32 = arith.constant 0 : i32
    %c0_i32_0 = arith.constant 0 : i32
    %c0_i32_1 = arith.constant 0 : i32
    return %arg0, %c0_i32, %arg1, %c0_i32_0 : i32, i32, i32, i32
  }
}

</mosaic_0001>

<bundles_post_ra>
// kernel: tpu_custom_call.1
= control target key start
LH: loop header
LB: loop body
LE: loop exit
PB: predicated region body
PF: predicated region fallthrough
CT: control target
= control target key end

     0   :  { %s943_s0 = inlined_call_operand.hbm [shape: f32[2,4,2,128], index: 0, kind: input, shape index: {}]   ;;  %s944_s1 = inlined_call_operand.hbm [shape: f32[4,4], index: 1, kind: input, shape index: {}]   ;;  %s945_s2 = inlined_call_operand.vmem [shape: f32[4], index: 2, kind: input, shape index: {}]   ;;  %s946_s3 = inlined_call_operand.hbm [shape: f32[2,4,2,128], index: 3, kind: output, shape index: {}]  }
   0x1   :  { %947 = sst [smem:[#allocation14_spill]] %s944_s1 }
   0x2   :  { %8 = vsyncpa [#allocation3], 0 }
   0x3   :  { %10 = vsyncpa [#allocation3 + $0x1], 0 }
   0x4   :  { %11 = vsyncpa [#allocation5], 0 }
   0x5   :  { %12 = vsyncpa [#allocation6], 0 }
   0x6   :  { %13 = vsyncpa [#allocation4], 0 }
   0x7   :  { %15 = vsyncpa [#allocation4 + $0x1], 0  ;;  %s761_s12 = smov 0   ;;  %s763_s13 = smov 0  }
   0x8   :  { %s765_s14 = smov 0   ;;  %s767_s15 = smov 0  }
   0x9   :  { %s769_s16 = smov 0   ;;  %s771_s17 = smov 0  }
   0xa LB: > { %s451_s18 = sadd.s32 4294967295, %s733_s17   ;;  %s452_s19 = sadd.s32 4294967294, %s733_s17   ;;  %s733_s17 = sphi %s771_s17, %s21_s17   ;;  %s729_s16 = sphi %s769_s16, %s960_s16   ;;  %s725_s15 = sphi %s767_s15, %s959_s15   ;;  %s721_s14 = sphi %s765_s14, %s958_s14   ;;  %s717_s13 = sphi %s763_s13, %s957_s13   ;;  %s713_s12 = sphi %s761_s12, %s956_s12  }
   0xb   : > { %s42_s20 = sadd.s32 1, %s721_s14  ;;  %p49_p0 = scmp.ne.s32.totalorder %s721_s14, %s717_s13 }
   0xc   : > { %p50_p1 = scmp.eq.s32.totalorder %s733_s17, 0  ;;  %p55_p2 = scmp.ne.s32.totalorder %s717_s13, %s713_s12 }
   0xd   : > { %p799_p3 = scmp.eq.s32.totalorder %s451_s18, 0  ;;  %p123_p4 = scmp.eq.s32.totalorder %s451_s18, 1 }
   0xe   : > { %p803_p5 = por %p50_p1, %p49_p0  ;;  %p129_p6 = scmp.eq.s32.totalorder %s452_s19, 1 }
   0xf   : > { %p809_p7 = por %p799_p3, %p55_p2  ;;  %p813_p8 = por %p123_p4, %p49_p0 }
  0x10   : > { %p817_p9 = por %p129_p6, %p55_p2  ;;  %p453_p10 = scmp.ge.s32.totalorder %s733_s17, 1 }
  0x11   : > { %p136_p11 = scmp.lt.s32.totalorder %s733_s17, 3  ;;  %s953_s1 = sld [smem:[#allocation14_spill]] }
  0x12   : > { %p456_p13 = scmp.ge.s32.totalorder %s733_s17, 2  ;;  %p525_p0 = scmp.lt.s32.totalorder %s733_s17, 2 }
  0x13   : > { %p826_p12 = pnand %p453_p10, %p136_p11  ;;  %s158_s5 = sshll.u32 %s945_s2, 4  ;;  %s159_s5 = int_to_ptr.vmem [resolvable:$true] %s158_s5 }
  0x14   : > { %p839_p2 = pnand %p525_p0, %p803_p5  ;;  %s735_s7 = smov [#allocation7]  }
  0x15   : > { %p508_p1 = pneg %p826_p12  ;;  %s736_s8 = smov [#allocation8]  }
  0x16   : > { %s33_s9 = sadd.s32 1, %s729_s16  ;;  %s169_s10 = sand.u32 1, %s721_s14  }
  0x17   : > { %s148_s28 = sshll.u32 %s953_s1, 4  ;;  %p509_p4 = pnand %p508_p1, %p799_p3  ;;  %s149_s28 = int_to_ptr.hbm [resolvable:$true] %s148_s28 }
  0x18   : > { %p35_p6 = scmp.ge.s32.totalorder %s33_s9, 2  ;;  %s457_s11 = sshll.u32 %s169_s10, 3 }
  0x19   : > { %511 = dma.hbm_to_smem (!%p509_p4), %s149_s28, 64, %s735_s7, [#allocation5]  }
  0x1a   : > { %514 = dma.vmem_to_smem (!%p509_p4), %s159_s5, 16, %s736_s8, [#allocation6]  }
  0x1b   : > { %s494_s18 = sshll.u32 %s729_s16, 3  ;;  %s962_s9 = smov (%p35_p6, %s33_s9), 0 }
  0x1c   : > { %s179_s26 = scalar_lea.hbm %s943_s0, %s494_s18  ;;  %s37_s27 = ssub.s32 %s729_s16, %s962_s9 }
  0x1d   : > { %s180_s30 = sshll.u32 %s179_s26, 4  ;;  %p40_p5 = scmp.eq.s32.totalorder %s37_s27, 0  ;;  %s181_s30 = int_to_ptr.hbm [resolvable:$true] %s180_s30 }
  0x1e   : > { %s173_s28 = scalar_lea.vmem [#allocation2], %s457_s11  ;;  %s170_s7 = scalar_lea.sflag [#allocation3], %s169_s10 }
  0x1f   : > { %s182_s4 = sshll.u32 %s173_s28, 4  ;;  %s737_s8 = smov 32   ;;  %s183_s4 = int_to_ptr.vmem [resolvable:$true] %s182_s4 }
  0x20   : > { %s858_s5 = scalar_select %p40_p5, %s721_s14, %s42_s20  }
  0x21   : > { %s738_s1 = smov 2   ;;  %194 = sbr.rel (%p826_p12) target bundleno = 82 (0x52), region = 32 }
  0x22   : > { %518 = dma.hbm_to_vmem [thread:$0]  (!%p839_p2), %s181_s30, 128, %s183_s4, %s170_s7, %s737_s8, %s737_s8, %s738_s1  }
  0x23   : > { %s865_s18 = sand.u32 (!%p826_p12), 1, %s717_s13  }
  0x24   : > { %s461_s11 = sshll.u32 (!%p826_p12), %s865_s18, 3  ;;  %s197_s19 = scalar_lea.sflag (!%p826_p12), [#allocation3], %s865_s18 }
  0x25   : > { %s871_s20 = scalar_lea.vmem (!%p826_p12), [#allocation2], %s461_s11 }
  0x26   : > { %696 = dma.done.wait (%p809_p7), %s197_s19, 128  }
  0x27   : > { %698 = vsyncadd (%p809_p7), %s197_s19, 4294967168 }
  0x28   : > { %700 = dma.done.wait (%p799_p3), [#allocation5], 64  }
  0x29   : > { %702 = vsyncadd (%p799_p3), [#allocation5], 4294967232 }
  0x2a   : > { %704 = dma.done.wait (%p799_p3), [#allocation6], 16  }
  0x2b   : > { %706 = vsyncadd (%p799_p3), [#allocation6], 4294967280 }
  0x2c   : > { %216 = sfence }
  0x2d   : > { %s242_s1 = sld [smem:[#allocation8]]  ;;  %v886_v0 = vld [vmem:[%s871_s20] sm:$0x3]  ;;  %v465_v4 = vld [vmem:[%s871_s20 + $0x2] sm:$0x3] }
  0x2e   : > { %s245_s29 = sld [smem:[#allocation7]]  ;;  %v466_v7 = vld [vmem:[%s871_s20 + $0x4] sm:$0x3]  ;;  %v467_v13 = vld [vmem:[%s871_s20 + $0x6] sm:$0x3] }
  0x2f   : > { %s468_s23 = sld [smem:[#allocation7 + $0x1]] }
  0x30   : > { %s469_s6 = sld [smem:[#allocation7 + $0x2]] }
  0x31   : > { %s470_s10 = sld [smem:[#allocation7 + $0x3]] }
  0x32   : > { %s471_s22 = sld [smem:[#allocation8 + $0x1]] }
  0x33   : > { %v243_v1 = vstv %s242_s1  ;;  %s472_s26 = sld [smem:[#allocation7 + $0x80]] }
  0x34   : > { %v244_v2 = vadd.f32 %v243_v1, %v886_v0  ;;  %v246_v3 = vstv %s245_s29  ;;  %s473_s21 = sld [smem:[#allocation7 + $0x81]] }
  0x35   : > { %v247_v5 = vmul.f32 %v246_v3, %v886_v0  ;;  %v250_v6 = vstv %s468_s23  ;;  %s474_s27 = sld [smem:[#allocation7 + $0x82]]  ;;  %s896_s23 = scalar_lea.vmem [#allocation9], %s461_s11 }
  0x36   : > { %v251_v8 = vmul.f32 %v465_v4, %v250_v6  ;;  %v254_v9 = vstv %s469_s6  ;;  %s475_s30 = sld [smem:[#allocation7 + $0x83]] }
  0x37   : > { %v248_v10 = vadd.f32 %v247_v5, %v244_v2  ;;  %v255_v11 = vmul.f32 %v466_v7, %v254_v9  ;;  %v258_v12 = vstv %s470_s10  ;;  %s477_s28 = sld [smem:[#allocation8 + $0x2]] }
  0x38   : > { %v263_v14 = vstv %s471_s22  ;;  %s478_s4 = sld [smem:[#allocation7 + $0x100]]  ;;  %v259_v16 = vmul.f32 %v467_v13, %v258_v12  ;;  %s495_s22 = sshll.u32 %s725_s15, 3 }
  0x39   : > { %v252_v15 = vadd.f32 %v251_v8, %v248_v10  ;;  %v264_v17 = vadd.f32 %v465_v4, %v263_v14  ;;  %v266_v18 = vstv %s472_s26  ;;  %s479_s7 = sld [smem:[#allocation7 + $0x101]]  ;;  %s339_s15 = sshll.u32 %s896_s23, 4  ;;  %s340_s15 = int_to_ptr.vmem [resolvable:$true] %s339_s15 }
  0x3a   : > { %v267_v19 = vmul.f32 %v266_v18, %v886_v0  ;;  %v270_v20 = vstv %s473_s21  ;;  %s480_s8 = sld [smem:[#allocation7 + $0x102]]  ;;  %s338_s21 = scalar_lea.hbm %s946_s3, %s495_s22 }
  0x3b   : > { %v256_v21 = vadd.f32 %v255_v11, %v252_v15  ;;  %v271_v22 = vmul.f32 %v465_v4, %v270_v20  ;;  %v274_v23 = vstv %s474_s27  ;;  %s481_s19 = sld [smem:[#allocation7 + $0x103]]  ;;  %s341_s27 = sshll.u32 %s338_s21, 4  ;;  %s342_s27 = int_to_ptr.hbm [resolvable:$true] %s341_s27 }
  0x3c   : > { %v268_v24 = vadd.f32 %v267_v19, %v264_v17  ;;  %v275_v25 = vmul.f32 %v466_v7, %v274_v23  ;;  %v278_v26 = vstv %s475_s30  ;;  %s483_s20 = sld [smem:[#allocation8 + $0x3]]  ;;  %s326_s30 = scalar_lea.sflag [#allocation4], %s865_s18 }
  0x3d   : > { %v260_v27 = vadd.f32 %v259_v16, %v256_v21  ;;  %v284_v28 = vstv %s477_s28  ;;  %s484_s1 = sld [smem:[#allocation7 + $0x180]]  ;;  %v279_v30 = vmul.f32 %v467_v13, %v278_v26  ;;  %s657_s28 = sshra.s32 %s342_s27, 4  ;;  %s658_s28 = int_to_ptr.hbm [resolvable:$true] %s657_s28 }
  0x3e   : > { %v272_v29 = vadd.f32 %v271_v22, %v268_v24  ;;  %v285_v31 = vadd.f32 %v466_v7, %v284_v28  ;;  %v287_v32 = vstv %s478_s4  ;;  %s485_s29 = sld [smem:[#allocation7 + $0x181]]  ;;  %s659_s4 = scalar_lea.hbm %s658_s28, 8 }
  0x3f   : > { %261 = vst [vmem:[%s896_s23] sm:$0x3] %v260_v27  ;;  %v288_v33 = vmul.f32 %v287_v32, %v886_v0  ;;  %v291_v34 = vstv %s479_s7  ;;  %s486_s6 = sld [smem:[#allocation7 + $0x182]]  ;;  %p660_p3 = scmp.ne.s32.totalorder %s658_s28, %s659_s4 }
  0x40   : > { %v276_v35 = vadd.f32 %v275_v25, %v272_v29  ;;  %v292_v36 = vmul.f32 %v465_v4, %v291_v34  ;;  %v295_v37 = vstv %s480_s8  ;;  %s487_s10 = sld [smem:[#allocation7 + $0x183]]  ;;  %p664_p11 = scmp.lt.s32.totalorder %s658_s28, %s946_s3 }
  0x41   : > { %v289_v38 = vadd.f32 %v288_v33, %v285_v31  ;;  %v296_v39 = vmul.f32 %v466_v7, %v295_v37  ;;  %v299_v40 = vstv %s481_s19  ;;  %p661_p7 = pnand %p660_p3, %p813_p8  ;;  %s663_s19 = scalar_lea.hbm %s946_s3, 16 }
  0x42   : > { %v280_v41 = vadd.f32 %v279_v30, %v276_v35  ;;  %v305_v42 = vstv %s483_s20  ;;  %v300_v44 = vmul.f32 %v467_v13, %v299_v40  ;;  %p665_p12 = scmp.lt.s32.totalorder %s663_s19, %s659_s4 }
  0x43   : > { %v293_v43 = vadd.f32 %v292_v36, %v289_v38  ;;  %v306_v45 = vadd.f32 %v467_v13, %v305_v42  ;;  %v308_v46 = vstv %s484_s1  ;;  %p662_p10 = pneg %p661_p7 }
  0x44   : > { %476 = vst [vmem:[%s896_s23 + $0x2] sm:$0x3] %v280_v41  ;;  %v309_v47 = vmul.f32 %v308_v46, %v886_v0  ;;  %v312_v48 = vstv %s485_s29  ;;  %p666_p0 = por %p665_p12, %p664_p11 }
  0x45   : > { %v297_v49 = vadd.f32 %v296_v39, %v293_v43  ;;  %v313_v50 = vmul.f32 %v465_v4, %v312_v48  ;;  %v316_v51 = vstv %s486_s6 }
  0x46   : > { %v310_v52 = vadd.f32 %v309_v47, %v306_v45  ;;  %v317_v53 = vmul.f32 %v466_v7, %v316_v51  ;;  %v320_v54 = vstv %s487_s10  ;;  %p667_p1 = pnand %p666_p0, %p662_p10 }
  0x47   : > { %v301_v55 = vadd.f32 %v300_v44, %v297_v49  ;;  %v321_v57 = vmul.f32 %v467_v13, %v320_v54 }
  0x48   : > { %v314_v56 = vadd.f32 %v313_v50, %v310_v52 }
  0x49   : > { %482 = vst [vmem:[%s896_s23 + $0x4] sm:$0x3] %v301_v55 }
  0x4a   : > { %v318_v58 = vadd.f32 %v317_v53, %v314_v56 }
  0x4c   : > { %v322_v59 = vadd.f32 %v321_v57, %v318_v58 }
  0x4e   : > { %488 = vst [vmem:[%s896_s23 + $0x6] sm:$0x3] %v322_v59 }
  0x4f   : > { %670 = shalt.err (!%p667_p1)
}
  0x50   : > { %s739_s18 = smov 32   ;;  %s740_s29 = smov 2  }
  0x51   : > { %506 = dma.vmem_to_hbm [thread:$0]  (%p813_p8), %s340_s15, 128, %s342_s27, %s326_s30, %s739_s18, %s739_s18, %s740_s29  }
  0x52 PF: > { %s356_s23 = sand.u32 1, %s713_s12   ;;  %p520_p2 = pnand %p456_p13, %p817_p9 }
  0x53   : > { %s357_s6 = scalar_lea.sflag [#allocation4], %s356_s23 }
  0x54   : > { %p521_p4 = pneg %p520_p2 }
  0x56   : > { %708 = dma.done.wait (%p521_p4), %s357_s6, 128  }
  0x57   : > { %710 = vsyncadd (%p521_p4), %s357_s6, 4294967168  ;;  %s21_s17 = sadd.s32 1, %s733_s17   ;;  %s956_s12 = smov %s717_s13 }
  0x58   : > { %p18_p6 = scmp.ge.s32.totalorder %s21_s17, 4   ;;  %s957_s13 = smov %s721_s14 }
  0x59   : > { %s958_s14 = smov %s858_s5  ;;  %s959_s15 = smov %s729_s16 }
  0x5a   : > { %s960_s16 = smov %s962_s9  ;;  %20 = sbr.rel (!%p18_p6) target bundleno = 10 (0xa), region = 93 }
  0x5f   :  { %363 = vsyncpa [#allocation3], 1 }
  0x60   :  { %365 = vsyncpa [#allocation3 + $0x1], 1 }
  0x61   :  { %366 = vsyncpa [#allocation4], 1 }
  0x62   :  { %368 = vsyncpa [#allocation4 + $0x1], 1 }
  0x63   :  { %369 = vsyncpa [#allocation5], 1 }
  0x64   :  { %371 = vsyncpa [#allocation5 + $0x1], 1 }
  0x65   :  { %372 = vsyncpa [#allocation6], 1 }
  0x66   :  { %374 = vsyncpa [#allocation6 + $0x1], 1 }

</bundles_post_ra>
